<compile_context>
chip_gen: v5e
topology: v5e:2x2
jax: 0.10.0
libtpu: 0.0.40
codegen_flags: <defaults>
</compile_context>

<pallas_src>
import functools
import math

import jax
import jax.numpy as jnp
from jax.experimental import pallas as pl
from jax.experimental.pallas import tpu as pltpu

NEGATIVE_SLOPE = 0.01  # F.leaky_relu_ default
LANE = 128
SUBLANE = 8


def _round_up(x, m):
    return (x + m - 1) // m * m


def _fused_mlp_kernel(*refs, num_layers, compute_dtype):
    """refs = (x_ref, w0, b0, w1, b1, ..., w{L-1}, b{L-1}, o_ref)."""
    x_ref = refs[0]
    o_ref = refs[-1]
    wb = refs[1:-1]

    h = x_ref[...]  # already in compute_dtype (bf16 by default)
    for l in range(num_layers):
        w = wb[2 * l][...]
        b = wb[2 * l + 1][...]  # (1, N) f32 bias row -> broadcasts over batch rows
        # MXU matmul with f32 accumulation; bias add in f32.
        y = jnp.dot(h, w, preferred_element_type=jnp.float32) + b
        if l < num_layers - 1:
            # leaky_relu: max(y, slope*y) — single vmul + vmax on the VPU (f32).
            y = jnp.maximum(y, NEGATIVE_SLOPE * y)
            h = y.astype(compute_dtype)  # back to MXU-native dtype for the next layer
        else:
            h = y
    o_ref[...] = h.astype(o_ref.dtype)


def prepare_params(params, *, compute_dtype=jnp.bfloat16):
    """One-time parameter prep (do NOT call per forward):

    * pad first layer's K (input_dim) up to a full sublane group (8) with zero rows,
    * pad the final layer to 128 output lanes (zero columns / zero bias entries),
    * cast weights to the MXU compute dtype (bf16 by default),
    * keep biases as (1, N) f32 rows (bias add stays in f32).
    """
    num_layers = len(params)
    in_dim = params[0][0].shape[0]
    out_dim = params[-1][1].shape[0]
    k_pad = _round_up(max(in_dim, SUBLANE), SUBLANE)
    n_pad = _round_up(max(out_dim, LANE), LANE)

    weights = []
    for li, (w, b) in enumerate(params):
        w = jnp.asarray(w, jnp.float32)
        b = jnp.asarray(b, jnp.float32)
        if li == 0 and w.shape[0] != k_pad:
            w = jnp.pad(w, ((0, k_pad - w.shape[0]), (0, 0)))
        if li == num_layers - 1 and w.shape[1] != n_pad:
            w = jnp.pad(w, ((0, 0), (0, n_pad - w.shape[1])))
            b = jnp.pad(b, (0, n_pad - b.shape[0]))
        weights.append((w.astype(compute_dtype), b.reshape(1, -1)))

    return dict(weights=weights, in_dim=in_dim, k_pad=k_pad,
                out_dim=out_dim, n_pad=n_pad, compute_dtype=compute_dtype)


def leafnet_forward(x, prepared, *, tm=None):
    """Fused forward pass of the whole MLP in a single pallas_call.

    x:        (M, input_dim) activations.
    prepared: output of prepare_params().
    tm:       batch tile. Default min(256, round_up(M, 8)); use 128 on v5e.
    """
    M, in_dim = x.shape
    assert in_dim == prepared["in_dim"]
    weights = prepared["weights"]
    num_layers = len(weights)
    k_pad = prepared["k_pad"]
    n_pad = prepared["n_pad"]
    out_dim = prepared["out_dim"]
    compute_dtype = prepared["compute_dtype"]
    out_dtype = x.dtype

    # Batch tile: 256 matches the 2x256^2 MXU rows on v6e/v7x and keeps the "parallel"
    # grid axis >= 2 steps for large batches so both v7x TensorCores run.
    if tm is None:
        tm = min(256, _round_up(M, SUBLANE))
    tm = _round_up(tm, SUBLANE)
    m_pad = _round_up(M, tm)  # pad batch instead of asserting divisibility

    x_p = x
    if (m_pad, k_pad) != (M, in_dim):
        x_p = jnp.pad(x, ((0, m_pad - M), (0, k_pad - in_dim)))
    x_p = x_p.astype(compute_dtype)

    kernel = functools.partial(_fused_mlp_kernel, num_layers=num_layers,
                               compute_dtype=compute_dtype)

    # Explicit VMEM budget: resident weights/biases (x2 buffering worst case) +
    # double-buffered x/out blocks + live f32 activation-chain headroom.
    weight_bytes = sum(w.size * w.dtype.itemsize + b.size * b.dtype.itemsize
                       for w, b in weights)
    max_width = max(max(w.shape[1] for w, _ in weights), n_pad)
    io_bytes = 2 * 2 * tm * (k_pad + n_pad) * jnp.dtype(compute_dtype).itemsize
    act_bytes = 4 * tm * max_width * 4
    vmem_limit = int(min(max(2 * weight_bytes + io_bytes + act_bytes + (4 << 20),
                             32 << 20), 64 << 20))
    # TODO(synk): for layer widths where the bf16 weights alone exceed ~40 MiB (v7x has
    # only 64 MiB VMEM), stream each layer's weight in N/K tiles with pltpu.emit_pipeline
    # (keeping activations resident) instead of holding every layer's weight in VMEM.

    def _call(single_buffer_weights):
        weight_spec_kwargs = {}
        if single_buffer_weights:
            # Constant index_map (0, 0): never re-DMAed, so a single buffer suffices.
            weight_spec_kwargs = dict(pipeline_mode=pl.Buffered(buffer_count=1))

        in_specs = [pl.BlockSpec((tm, k_pad), lambda i: (i, 0))]
        flat_args = []
        for w, b in weights:
            in_specs.append(pl.BlockSpec(w.shape, lambda i: (0, 0), **weight_spec_kwargs))
            in_specs.append(pl.BlockSpec(b.shape, lambda i: (0, 0), **weight_spec_kwargs))
            flat_args.extend([w, b])

        return pl.pallas_call(
            kernel,
            out_shape=jax.ShapeDtypeStruct((m_pad, n_pad), out_dtype),
            grid=(m_pad // tm,),
            in_specs=in_specs,
            out_specs=pl.BlockSpec((tm, n_pad), lambda i: (i, 0)),
            compiler_params=pltpu.CompilerParams(
                dimension_semantics=("parallel",),
                vmem_limit_bytes=vmem_limit,
            ),
        )(x_p, *flat_args)

    try:
        out = _call(True)
    except Exception:
        # Some jax versions reject single-buffered BlockSpecs on pallas_call; the default
        # double-buffered path is functionally identical (just more weight VMEM).
        out = _call(False)

    return out[:M, :out_dim]


def init_leafnet_params(key, layer_count=3, layer_width=128,
                        input_dim=2, output_dim=4, dtype=jnp.float32):
    """PyTorch-style Linear init: U(-1/sqrt(fan_in), 1/sqrt(fan_in)) for W and b."""
    dims = [input_dim] + [layer_width] * (layer_count + 1) + [output_dim]
    params = []
    for fan_in, fan_out in zip(dims[:-1], dims[1:]):
        key, wk, bk = jax.random.split(key, 3)
        bound = 1.0 / math.sqrt(fan_in)
        w = jax.random.uniform(wk, (fan_in, fan_out), dtype, -bound, bound)
        b = jax.random.uniform(bk, (fan_out,), dtype, -bound, bound)
        params.append((w, b))
    return params


def leafnet_reference(x, params):
    h = x
    for w, b in params[:-1]:
        h = h @ w + b
        h = jnp.where(h >= 0, h, NEGATIVE_SLOPE * h)
    w, b = params[-1]
    return h @ w + b


if __name__ == "__main__":
    key = jax.random.PRNGKey(0)
    pkey, xkey = jax.random.split(key)

    # Small shapes consistent with the module: input_dim=2, output_dim=4.
    layer_count, layer_width, batch = 3, 128, 16
    params = init_leafnet_params(pkey, layer_count=layer_count, layer_width=layer_width)
    x = jax.random.normal(xkey, (batch, 2), jnp.float32)

    ref = leafnet_reference(x, params)

    # f32 compute path: exact check against the pure-JAX reference.
    prep_f32 = prepare_params(params, compute_dtype=jnp.float32)
    out_f32 = jax.block_until_ready(leafnet_forward(x, prep_f32))
    assert out_f32.shape == (batch, 4)
    assert jnp.allclose(out_f32, ref, atol=1e-5, rtol=1e-5)

    # bf16 compute path (production perf path): MXU-native operands, f32 accumulation.
    prep_bf16 = prepare_params(params, compute_dtype=jnp.bfloat16)
    out_bf16 = jax.block_until_ready(leafnet_forward(x, prep_bf16))
    assert out_bf16.shape == (batch, 4)
    assert jnp.allclose(out_bf16.astype(jnp.float32), ref, atol=1e-1, rtol=1e-1)

    print("KERNEL_OK")
</pallas_src>

<mosaic_0001>
module attributes {stable_mosaic.version = 11 : i64} {
  func.func @_fused_mlp_kernel(%arg0: i32, %arg1: memref<16x8xf32, #tpu.memory_space<vmem>>, %arg2: memref<8x128xf32, #tpu.memory_space<vmem>>, %arg3: memref<1x128xf32, #tpu.memory_space<vmem>>, %arg4: memref<128x128xf32, #tpu.memory_space<vmem>>, %arg5: memref<1x128xf32, #tpu.memory_space<vmem>>, %arg6: memref<128x128xf32, #tpu.memory_space<vmem>>, %arg7: memref<1x128xf32, #tpu.memory_space<vmem>>, %arg8: memref<128x128xf32, #tpu.memory_space<vmem>>, %arg9: memref<1x128xf32, #tpu.memory_space<vmem>>, %arg10: memref<128x128xf32, #tpu.memory_space<vmem>>, %arg11: memref<1x128xf32, #tpu.memory_space<vmem>>, %arg12: memref<16x128xf32, #tpu.memory_space<vmem>>) attributes {dimension_semantics = [#tpu.dimension_semantics<parallel>], iteration_bounds = array<i64: 1>, scalar_prefetch = 0 : i64, scratch_operands = 0 : i64, tpu.core_type = #tpu.core_type<tc>, window_params = [{transform_indices = @transform_0, window_bounds = array<i64: 16, 8>}, {pipeline_mode = #tpu.pipeline_mode<synchronous>, transform_indices = @transform_1, window_bounds = array<i64: 8, 128>}, {pipeline_mode = #tpu.pipeline_mode<synchronous>, transform_indices = @transform_2, window_bounds = array<i64: 1, 128>}, {pipeline_mode = #tpu.pipeline_mode<synchronous>, transform_indices = @transform_3, window_bounds = array<i64: 128, 128>}, {pipeline_mode = #tpu.pipeline_mode<synchronous>, transform_indices = @transform_4, window_bounds = array<i64: 1, 128>}, {pipeline_mode = #tpu.pipeline_mode<synchronous>, transform_indices = @transform_5, window_bounds = array<i64: 128, 128>}, {pipeline_mode = #tpu.pipeline_mode<synchronous>, transform_indices = @transform_6, window_bounds = array<i64: 1, 128>}, {pipeline_mode = #tpu.pipeline_mode<synchronous>, transform_indices = @transform_7, window_bounds = array<i64: 128, 128>}, {pipeline_mode = #tpu.pipeline_mode<synchronous>, transform_indices = @transform_8, window_bounds = array<i64: 1, 128>}, {pipeline_mode = #tpu.pipeline_mode<synchronous>, transform_indices = @transform_9, window_bounds = array<i64: 128, 128>}, {pipeline_mode = #tpu.pipeline_mode<synchronous>, transform_indices = @transform_10, window_bounds = array<i64: 1, 128>}, {transform_indices = @transform_11, window_bounds = array<i64: 16, 128>}]} {
    %c0 = arith.constant 0 : index
    %c0_0 = arith.constant 0 : index
    %0 = vector.load %arg1[%c0, %c0_0] : memref<16x8xf32, #tpu.memory_space<vmem>>, vector<16x8xf32>
    %c0_1 = arith.constant 0 : index
    %c0_2 = arith.constant 0 : index
    %1 = vector.load %arg2[%c0_1, %c0_2] : memref<8x128xf32, #tpu.memory_space<vmem>>, vector<8x128xf32>
    %c0_3 = arith.constant 0 : index
    %c0_4 = arith.constant 0 : index
    %2 = vector.load %arg3[%c0_3, %c0_4] : memref<1x128xf32, #tpu.memory_space<vmem>>, vector<1x128xf32>
    %cst = arith.constant dense<0.000000e+00> : vector<16x128xf32>
    %3 = tpu.matmul %0, %1, %cst {dimension_numbers = #tpu.dot_dimension_numbers<[1], [0], [0], [1], [0, 0, 1, 1], [], []>} : vector<16x8xf32>, vector<8x128xf32>, vector<16x128xf32> -> vector<16x128xf32>
    %4 = vector.broadcast %2 : vector<1x128xf32> to vector<16x128xf32>
    %5 = arith.addf %3, %4 : vector<16x128xf32>
    %cst_5 = arith.constant 0.00999999977 : f32
    %6 = vector.broadcast %cst_5 : f32 to vector<16x128xf32>
    %7 = arith.mulf %6, %5 : vector<16x128xf32>
    %8 = arith.maximumf %5, %7 : vector<16x128xf32>
    %c0_6 = arith.constant 0 : index
    %c0_7 = arith.constant 0 : index
    %9 = vector.load %arg4[%c0_6, %c0_7] : memref<128x128xf32, #tpu.memory_space<vmem>>, vector<128x128xf32>
    %c0_8 = arith.constant 0 : index
    %c0_9 = arith.constant 0 : index
    %10 = vector.load %arg5[%c0_8, %c0_9] : memref<1x128xf32, #tpu.memory_space<vmem>>, vector<1x128xf32>
    %cst_10 = arith.constant dense<0.000000e+00> : vector<16x128xf32>
    %11 = tpu.matmul %8, %9, %cst_10 {dimension_numbers = #tpu.dot_dimension_numbers<[1], [0], [0], [1], [0, 0, 1, 1], [], []>} : vector<16x128xf32>, vector<128x128xf32>, vector<16x128xf32> -> vector<16x128xf32>
    %12 = vector.broadcast %10 : vector<1x128xf32> to vector<16x128xf32>
    %13 = arith.addf %11, %12 : vector<16x128xf32>
    %cst_11 = arith.constant 0.00999999977 : f32
    %14 = vector.broadcast %cst_11 : f32 to vector<16x128xf32>
    %15 = arith.mulf %14, %13 : vector<16x128xf32>
    %16 = arith.maximumf %13, %15 : vector<16x128xf32>
    %c0_12 = arith.constant 0 : index
    %c0_13 = arith.constant 0 : index
    %17 = vector.load %arg6[%c0_12, %c0_13] : memref<128x128xf32, #tpu.memory_space<vmem>>, vector<128x128xf32>
    %c0_14 = arith.constant 0 : index
    %c0_15 = arith.constant 0 : index
    %18 = vector.load %arg7[%c0_14, %c0_15] : memref<1x128xf32, #tpu.memory_space<vmem>>, vector<1x128xf32>
    %cst_16 = arith.constant dense<0.000000e+00> : vector<16x128xf32>
    %19 = tpu.matmul %16, %17, %cst_16 {dimension_numbers = #tpu.dot_dimension_numbers<[1], [0], [0], [1], [0, 0, 1, 1], [], []>} : vector<16x128xf32>, vector<128x128xf32>, vector<16x128xf32> -> vector<16x128xf32>
    %20 = vector.broadcast %18 : vector<1x128xf32> to vector<16x128xf32>
    %21 = arith.addf %19, %20 : vector<16x128xf32>
    %cst_17 = arith.constant 0.00999999977 : f32
    %22 = vector.broadcast %cst_17 : f32 to vector<16x128xf32>
    %23 = arith.mulf %22, %21 : vector<16x128xf32>
    %24 = arith.maximumf %21, %23 : vector<16x128xf32>
    %c0_18 = arith.constant 0 : index
    %c0_19 = arith.constant 0 : index
    %25 = vector.load %arg8[%c0_18, %c0_19] : memref<128x128xf32, #tpu.memory_space<vmem>>, vector<128x128xf32>
    %c0_20 = arith.constant 0 : index
    %c0_21 = arith.constant 0 : index
    %26 = vector.load %arg9[%c0_20, %c0_21] : memref<1x128xf32, #tpu.memory_space<vmem>>, vector<1x128xf32>
    %cst_22 = arith.constant dense<0.000000e+00> : vector<16x128xf32>
    %27 = tpu.matmul %24, %25, %cst_22 {dimension_numbers = #tpu.dot_dimension_numbers<[1], [0], [0], [1], [0, 0, 1, 1], [], []>} : vector<16x128xf32>, vector<128x128xf32>, vector<16x128xf32> -> vector<16x128xf32>
    %28 = vector.broadcast %26 : vector<1x128xf32> to vector<16x128xf32>
    %29 = arith.addf %27, %28 : vector<16x128xf32>
    %cst_23 = arith.constant 0.00999999977 : f32
    %30 = vector.broadcast %cst_23 : f32 to vector<16x128xf32>
    %31 = arith.mulf %30, %29 : vector<16x128xf32>
    %32 = arith.maximumf %29, %31 : vector<16x128xf32>
    %c0_24 = arith.constant 0 : index
    %c0_25 = arith.constant 0 : index
    %33 = vector.load %arg10[%c0_24, %c0_25] : memref<128x128xf32, #tpu.memory_space<vmem>>, vector<128x128xf32>
    %c0_26 = arith.constant 0 : index
    %c0_27 = arith.constant 0 : index
    %34 = vector.load %arg11[%c0_26, %c0_27] : memref<1x128xf32, #tpu.memory_space<vmem>>, vector<1x128xf32>
    %cst_28 = arith.constant dense<0.000000e+00> : vector<16x128xf32>
    %35 = tpu.matmul %32, %33, %cst_28 {dimension_numbers = #tpu.dot_dimension_numbers<[1], [0], [0], [1], [0, 0, 1, 1], [], []>} : vector<16x128xf32>, vector<128x128xf32>, vector<16x128xf32> -> vector<16x128xf32>
    %36 = vector.broadcast %34 : vector<1x128xf32> to vector<16x128xf32>
    %37 = arith.addf %35, %36 : vector<16x128xf32>
    %c0_29 = arith.constant 0 : index
    %c0_30 = arith.constant 0 : index
    %38 = vector.load %arg12[%c0_29, %c0_30] : memref<16x128xf32, #tpu.memory_space<vmem>>, vector<16x128xf32>
    tpu.vector_store %arg12[%c0_29, %c0_30], %37 {strides = array<i32>} : memref<16x128xf32, #tpu.memory_space<vmem>>, vector<16x128xf32>,
    return
  }
  func.func @transform_0(%arg0: i32) -> (i32, i32) {
    %c0_i32 = arith.constant 0 : i32
    %c0_i32_0 = arith.constant 0 : i32
    return %arg0, %c0_i32 : i32, i32
  }
  func.func @transform_1(%arg0: i32) -> (i32, i32) {
    %c0_i32 = arith.constant 0 : i32
    %c0_i32_0 = arith.constant 0 : i32
    %c0_i32_1 = arith.constant 0 : i32
    return %c0_i32, %c0_i32_0 : i32, i32
  }
  func.func @transform_2(%arg0: i32) -> (i32, i32) {
    %c0_i32 = arith.constant 0 : i32
    %c0_i32_0 = arith.constant 0 : i32
    %c0_i32_1 = arith.constant 0 : i32
    return %c0_i32, %c0_i32_0 : i32, i32
  }
  func.func @transform_3(%arg0: i32) -> (i32, i32) {
    %c0_i32 = arith.constant 0 : i32
    %c0_i32_0 = arith.constant 0 : i32
    %c0_i32_1 = arith.constant 0 : i32
    return %c0_i32, %c0_i32_0 : i32, i32
  }
  func.func @transform_4(%arg0: i32) -> (i32, i32) {
    %c0_i32 = arith.constant 0 : i32
    %c0_i32_0 = arith.constant 0 : i32
    %c0_i32_1 = arith.constant 0 : i32
    return %c0_i32, %c0_i32_0 : i32, i32
  }
  func.func @transform_5(%arg0: i32) -> (i32, i32) {
    %c0_i32 = arith.constant 0 : i32
    %c0_i32_0 = arith.constant 0 : i32
    %c0_i32_1 = arith.constant 0 : i32
    return %c0_i32, %c0_i32_0 : i32, i32
  }
  func.func @transform_6(%arg0: i32) -> (i32, i32) {
    %c0_i32 = arith.constant 0 : i32
    %c0_i32_0 = arith.constant 0 : i32
    %c0_i32_1 = arith.constant 0 : i32
    return %c0_i32, %c0_i32_0 : i32, i32
  }
  func.func @transform_7(%arg0: i32) -> (i32, i32) {
    %c0_i32 = arith.constant 0 : i32
    %c0_i32_0 = arith.constant 0 : i32
    %c0_i32_1 = arith.constant 0 : i32
    return %c0_i32, %c0_i32_0 : i32, i32
  }
  func.func @transform_8(%arg0: i32) -> (i32, i32) {
    %c0_i32 = arith.constant 0 : i32
    %c0_i32_0 = arith.constant 0 : i32
    %c0_i32_1 = arith.constant 0 : i32
    return %c0_i32, %c0_i32_0 : i32, i32
  }
  func.func @transform_9(%arg0: i32) -> (i32, i32) {
    %c0_i32 = arith.constant 0 : i32
    %c0_i32_0 = arith.constant 0 : i32
    %c0_i32_1 = arith.constant 0 : i32
    return %c0_i32, %c0_i32_0 : i32, i32
  }
  func.func @transform_10(%arg0: i32) -> (i32, i32) {
    %c0_i32 = arith.constant 0 : i32
    %c0_i32_0 = arith.constant 0 : i32
    %c0_i32_1 = arith.constant 0 : i32
    return %c0_i32, %c0_i32_0 : i32, i32
  }
  func.func @transform_11(%arg0: i32) -> (i32, i32) {
    %c0_i32 = arith.constant 0 : i32
    %c0_i32_0 = arith.constant 0 : i32
    return %arg0, %c0_i32 : i32, i32
  }
}

module attributes {stable_mosaic.version = 11 : i64} {
  func.func @_fused_mlp_kernel(%arg0: i32, %arg1: memref<16x8xf32, #tpu.memory_space<vmem>>, %arg2: memref<8x128xf32, #tpu.memory_space<vmem>>, %arg3: memref<1x128xf32, #tpu.memory_space<vmem>>, %arg4: memref<128x128xf32, #tpu.memory_space<vmem>>, %arg5: memref<1x128xf32, #tpu.memory_space<vmem>>, %arg6: memref<128x128xf32, #tpu.memory_space<vmem>>, %arg7: memref<1x128xf32, #tpu.memory_space<vmem>>, %arg8: memref<128x128xf32, #tpu.memory_space<vmem>>, %arg9: memref<1x128xf32, #tpu.memory_space<vmem>>, %arg10: memref<128x128xf32, #tpu.memory_space<vmem>>, %arg11: memref<1x128xf32, #tpu.memory_space<vmem>>, %arg12: memref<16x128xf32, #tpu.memory_space<vmem>>) attributes {dimension_semantics = [#tpu.dimension_semantics<parallel>], iteration_bounds = array<i64: 1>, scalar_prefetch = 0 : i64, scratch_operands = 0 : i64, tpu.core_type = #tpu.core_type<tc>, window_params = [{transform_indices = @transform_0, window_bounds = array<i64: 16, 8>}, {pipeline_mode = #tpu.pipeline_mode<synchronous>, transform_indices = @transform_1, window_bounds = array<i64: 8, 128>}, {pipeline_mode = #tpu.pipeline_mode<synchronous>, transform_indices = @transform_2, window_bounds = array<i64: 1, 128>}, {pipeline_mode = #tpu.pipeline_mode<synchronous>, transform_indices = @transform_3, window_bounds = array<i64: 128, 128>}, {pipeline_mode = #tpu.pipeline_mode<synchronous>, transform_indices = @transform_4, window_bounds = array<i64: 1, 128>}, {pipeline_mode = #tpu.pipeline_mode<synchronous>, transform_indices = @transform_5, window_bounds = array<i64: 128, 128>}, {pipeline_mode = #tpu.pipeline_mode<synchronous>, transform_indices = @transform_6, window_bounds = array<i64: 1, 128>}, {pipeline_mode = #tpu.pipeline_mode<synchronous>, transform_indices = @transform_7, window_bounds = array<i64: 128, 128>}, {pipeline_mode = #tpu.pipeline_mode<synchronous>, transform_indices = @transform_8, window_bounds = array<i64: 1, 128>}, {pipeline_mode = #tpu.pipeline_mode<synchronous>, transform_indices = @transform_9, window_bounds = array<i64: 128, 128>}, {pipeline_mode = #tpu.pipeline_mode<synchronous>, transform_indices = @transform_10, window_bounds = array<i64: 1, 128>}, {transform_indices = @transform_11, window_bounds = array<i64: 16, 128>}]} {
    %c0 = arith.constant 0 : index
    %c0_0 = arith.constant 0 : index
    %0 = vector.load %arg1[%c0, %c0_0] : memref<16x8xf32, #tpu.memory_space<vmem>>, vector<16x8xf32>
    %c0_1 = arith.constant 0 : index
    %c0_2 = arith.constant 0 : index
    %1 = vector.load %arg2[%c0_1, %c0_2] : memref<8x128xf32, #tpu.memory_space<vmem>>, vector<8x128xf32>
    %c0_3 = arith.constant 0 : index
    %c0_4 = arith.constant 0 : index
    %2 = vector.load %arg3[%c0_3, %c0_4] : memref<1x128xf32, #tpu.memory_space<vmem>>, vector<1x128xf32>
    %cst = arith.constant dense<0.000000e+00> : vector<16x128xf32>
    %3 = tpu.matmul %0, %1, %cst {dimension_numbers = #tpu.dot_dimension_numbers<[1], [0], [0], [1], [0, 0, 1, 1], [], []>} : vector<16x8xf32>, vector<8x128xf32>, vector<16x128xf32> -> vector<16x128xf32>
    %4 = vector.broadcast %2 : vector<1x128xf32> to vector<16x128xf32>
    %5 = arith.addf %3, %4 : vector<16x128xf32>
    %cst_5 = arith.constant 0.00999999977 : f32
    %6 = vector.broadcast %cst_5 : f32 to vector<16x128xf32>
    %7 = arith.mulf %6, %5 : vector<16x128xf32>
    %8 = arith.maximumf %5, %7 : vector<16x128xf32>
    %c0_6 = arith.constant 0 : index
    %c0_7 = arith.constant 0 : index
    %9 = vector.load %arg4[%c0_6, %c0_7] : memref<128x128xf32, #tpu.memory_space<vmem>>, vector<128x128xf32>
    %c0_8 = arith.constant 0 : index
    %c0_9 = arith.constant 0 : index
    %10 = vector.load %arg5[%c0_8, %c0_9] : memref<1x128xf32, #tpu.memory_space<vmem>>, vector<1x128xf32>
    %cst_10 = arith.constant dense<0.000000e+00> : vector<16x128xf32>
    %11 = tpu.matmul %8, %9, %cst_10 {dimension_numbers = #tpu.dot_dimension_numbers<[1], [0], [0], [1], [0, 0, 1, 1], [], []>} : vector<16x128xf32>, vector<128x128xf32>, vector<16x128xf32> -> vector<16x128xf32>
    %12 = vector.broadcast %10 : vector<1x128xf32> to vector<16x128xf32>
    %13 = arith.addf %11, %12 : vector<16x128xf32>
    %cst_11 = arith.constant 0.00999999977 : f32
    %14 = vector.broadcast %cst_11 : f32 to vector<16x128xf32>
    %15 = arith.mulf %14, %13 : vector<16x128xf32>
    %16 = arith.maximumf %13, %15 : vector<16x128xf32>
    %c0_12 = arith.constant 0 : index
    %c0_13 = arith.constant 0 : index
    %17 = vector.load %arg6[%c0_12, %c0_13] : memref<128x128xf32, #tpu.memory_space<vmem>>, vector<128x128xf32>
    %c0_14 = arith.constant 0 : index
    %c0_15 = arith.constant 0 : index
    %18 = vector.load %arg7[%c0_14, %c0_15] : memref<1x128xf32, #tpu.memory_space<vmem>>, vector<1x128xf32>
    %cst_16 = arith.constant dense<0.000000e+00> : vector<16x128xf32>
    %19 = tpu.matmul %16, %17, %cst_16 {dimension_numbers = #tpu.dot_dimension_numbers<[1], [0], [0], [1], [0, 0, 1, 1], [], []>} : vector<16x128xf32>, vector<128x128xf32>, vector<16x128xf32> -> vector<16x128xf32>
    %20 = vector.broadcast %18 : vector<1x128xf32> to vector<16x128xf32>
    %21 = arith.addf %19, %20 : vector<16x128xf32>
    %cst_17 = arith.constant 0.00999999977 : f32
    %22 = vector.broadcast %cst_17 : f32 to vector<16x128xf32>
    %23 = arith.mulf %22, %21 : vector<16x128xf32>
    %24 = arith.maximumf %21, %23 : vector<16x128xf32>
    %c0_18 = arith.constant 0 : index
    %c0_19 = arith.constant 0 : index
    %25 = vector.load %arg8[%c0_18, %c0_19] : memref<128x128xf32, #tpu.memory_space<vmem>>, vector<128x128xf32>
    %c0_20 = arith.constant 0 : index
    %c0_21 = arith.constant 0 : index
    %26 = vector.load %arg9[%c0_20, %c0_21] : memref<1x128xf32, #tpu.memory_space<vmem>>, vector<1x128xf32>
    %cst_22 = arith.constant dense<0.000000e+00> : vector<16x128xf32>
    %27 = tpu.matmul %24, %25, %cst_22 {dimension_numbers = #tpu.dot_dimension_numbers<[1], [0], [0], [1], [0, 0, 1, 1], [], []>} : vector<16x128xf32>, vector<128x128xf32>, vector<16x128xf32> -> vector<16x128xf32>
    %28 = vector.broadcast %26 : vector<1x128xf32> to vector<16x128xf32>
    %29 = arith.addf %27, %28 : vector<16x128xf32>
    %cst_23 = arith.constant 0.00999999977 : f32
    %30 = vector.broadcast %cst_23 : f32 to vector<16x128xf32>
    %31 = arith.mulf %30, %29 : vector<16x128xf32>
    %32 = arith.maximumf %29, %31 : vector<16x128xf32>
    %c0_24 = arith.constant 0 : index
    %c0_25 = arith.constant 0 : index
    %33 = vector.load %arg10[%c0_24, %c0_25] : memref<128x128xf32, #tpu.memory_space<vmem>>, vector<128x128xf32>
    %c0_26 = arith.constant 0 : index
    %c0_27 = arith.constant 0 : index
    %34 = vector.load %arg11[%c0_26, %c0_27] : memref<1x128xf32, #tpu.memory_space<vmem>>, vector<1x128xf32>
    %cst_28 = arith.constant dense<0.000000e+00> : vector<16x128xf32>
    %35 = tpu.matmul %32, %33, %cst_28 {dimension_numbers = #tpu.dot_dimension_numbers<[1], [0], [0], [1], [0, 0, 1, 1], [], []>} : vector<16x128xf32>, vector<128x128xf32>, vector<16x128xf32> -> vector<16x128xf32>
    %36 = vector.broadcast %34 : vector<1x128xf32> to vector<16x128xf32>
    %37 = arith.addf %35, %36 : vector<16x128xf32>
    %c0_29 = arith.constant 0 : index
    %c0_30 = arith.constant 0 : index
    %38 = vector.load %arg12[%c0_29, %c0_30] : memref<16x128xf32, #tpu.memory_space<vmem>>, vector<16x128xf32>
    tpu.vector_store %arg12[%c0_29, %c0_30], %37 {strides = array<i32>} : memref<16x128xf32, #tpu.memory_space<vmem>>, vector<16x128xf32>,
    return
  }
  func.func @transform_0(%arg0: i32) -> (i32, i32) {
    %c0_i32 = arith.constant 0 : i32
    %c0_i32_0 = arith.constant 0 : i32
    return %arg0, %c0_i32 : i32, i32
  }
  func.func @transform_1(%arg0: i32) -> (i32, i32) {
    %c0_i32 = arith.constant 0 : i32
    %c0_i32_0 = arith.constant 0 : i32
    %c0_i32_1 = arith.constant 0 : i32
    return %c0_i32, %c0_i32_0 : i32, i32
  }
  func.func @transform_2(%arg0: i32) -> (i32, i32) {
    %c0_i32 = arith.constant 0 : i32
    %c0_i32_0 = arith.constant 0 : i32
    %c0_i32_1 = arith.constant 0 : i32
    return %c0_i32, %c0_i32_0 : i32, i32
  }
  func.func @transform_3(%arg0: i32) -> (i32, i32) {
    %c0_i32 = arith.constant 0 : i32
    %c0_i32_0 = arith.constant 0 : i32
    %c0_i32_1 = arith.constant 0 : i32
    return %c0_i32, %c0_i32_0 : i32, i32
  }
  func.func @transform_4(%arg0: i32) -> (i32, i32) {
    %c0_i32 = arith.constant 0 : i32
    %c0_i32_0 = arith.constant 0 : i32
    %c0_i32_1 = arith.constant 0 : i32
    return %c0_i32, %c0_i32_0 : i32, i32
  }
  func.func @transform_5(%arg0: i32) -> (i32, i32) {
    %c0_i32 = arith.constant 0 : i32
    %c0_i32_0 = arith.constant 0 : i32
    %c0_i32_1 = arith.constant 0 : i32
    return %c0_i32, %c0_i32_0 : i32, i32
  }
  func.func @transform_6(%arg0: i32) -> (i32, i32) {
    %c0_i32 = arith.constant 0 : i32
    %c0_i32_0 = arith.constant 0 : i32
    %c0_i32_1 = arith.constant 0 : i32
    return %c0_i32, %c0_i32_0 : i32, i32
  }
  func.func @transform_7(%arg0: i32) -> (i32, i32) {
    %c0_i32 = arith.constant 0 : i32
    %c0_i32_0 = arith.constant 0 : i32
    %c0_i32_1 = arith.constant 0 : i32
    return %c0_i32, %c0_i32_0 : i32, i32
  }
  func.func @transform_8(%arg0: i32) -> (i32, i32) {
    %c0_i32 = arith.constant 0 : i32
    %c0_i32_0 = arith.constant 0 : i32
    %c0_i32_1 = arith.constant 0 : i32
    return %c0_i32, %c0_i32_0 : i32, i32
  }
  func.func @transform_9(%arg0: i32) -> (i32, i32) {
    %c0_i32 = arith.constant 0 : i32
    %c0_i32_0 = arith.constant 0 : i32
    %c0_i32_1 = arith.constant 0 : i32
    return %c0_i32, %c0_i32_0 : i32, i32
  }
  func.func @transform_10(%arg0: i32) -> (i32, i32) {
    %c0_i32 = arith.constant 0 : i32
    %c0_i32_0 = arith.constant 0 : i32
    %c0_i32_1 = arith.constant 0 : i32
    return %c0_i32, %c0_i32_0 : i32, i32
  }
  func.func @transform_11(%arg0: i32) -> (i32, i32) {
    %c0_i32 = arith.constant 0 : i32
    %c0_i32_0 = arith.constant 0 : i32
    return %arg0, %c0_i32 : i32, i32
  }
}

</mosaic_0001>

<bundles_post_ra>
// kernel: tpu_custom_call.1
= control target key start
LH: loop header
LB: loop body
LE: loop exit
PB: predicated region body
PF: predicated region fallthrough
CT: control target
= control target key end

     0   :  { %16 = vsyncpa [#allocation3], 0  ;;  %s615_s0 = inlined_call_operand.vmem [shape: f32[16,8], index: 0, kind: input, shape index: {}]   ;;  %s616_s1 = inlined_call_operand.vmem [shape: f32[8,128], index: 1, kind: input, shape index: {}]   ;;  %s617_s2 = inlined_call_operand.vmem [shape: f32[1,128], index: 2, kind: input, shape index: {}]   ;;  %s618_s3 = inlined_call_operand.hbm [shape: f32[128,128], index: 3, kind: input, shape index: {}]   ;;  %s619_s4 = inlined_call_operand.vmem [shape: f32[1,128], index: 4, kind: input, shape index: {}]   ;;  %s620_s5 = inlined_call_operand.hbm [shape: f32[128,128], index: 5, kind: input, shape index: {}]   ;;  %s621_s6 = inlined_call_operand.vmem [shape: f32[1,128], index: 6, kind: input, shape index: {}]   ;;  %s622_s7 = inlined_call_operand.hbm [shape: f32[128,128], index: 7, kind: input, shape index: {}]   ;;  %s623_s8 = inlined_call_operand.vmem [shape: f32[1,128], index: 8, kind: input, shape index: {}]   ;;  %s624_s9 = inlined_call_operand.hbm [shape: f32[128,128], index: 9, kind: input, shape index: {}]   ;;  %s625_s10 = inlined_call_operand.vmem [shape: f32[1,128], index: 10, kind: input, shape index: {}]   ;;  %s626_s11 = inlined_call_operand.hbm [shape: f32[16,128], index: 11, kind: output, shape index: {}]  }
   0x1   :  { %17 = vsyncpa [#allocation6], 0 }
   0x2   :  { %18 = vsyncpa [#allocation9], 0 }
   0x3   :  { %19 = vsyncpa [#allocation4], 0  ;;  %s45_s19 = sshll.u32 %s620_s5, 4  ;;  %s492_s20 = smov [#allocation5]   ;;  %s46_s19 = int_to_ptr.hbm [resolvable:$true] %s45_s19 }
   0x4   :  { %s47_s21 = sshll.u32 %s492_s20, 4  ;;  %s30_s24 = sshll.u32 %s618_s3, 4  ;;  %s48_s21 = int_to_ptr.vmem [resolvable:$true] %s47_s21  ;;  %s31_s24 = int_to_ptr.hbm [resolvable:$true] %s30_s24 }
   0x5   :  { %s493_s25 = smov 128   ;;  %s494_s26 = smov 8  }
   0x6   :  { %53 = dma.hbm_to_vmem [thread:$0]  %s46_s19, 2048, %s48_s21, [#allocation6], %s493_s25, %s493_s25, %s494_s26  }
   0x7   :  { %s495_s27 = smov [#allocation2]   ;;  %s60_s5 = sshll.u32 %s622_s7, 4  ;;  %s61_s5 = int_to_ptr.hbm [resolvable:$true] %s60_s5 }
   0x8   :  { %s32_s28 = sshll.u32 %s495_s27, 4  ;;  %s75_s13 = sshll.u32 %s624_s9, 4  ;;  %s33_s28 = int_to_ptr.vmem [resolvable:$true] %s32_s28  ;;  %s76_s13 = int_to_ptr.hbm [resolvable:$true] %s75_s13 }
   0x9   :  { %38 = dma.hbm_to_vmem [thread:$0]  %s31_s24, 2048, %s33_s28, [#allocation3], %s493_s25, %s493_s25, %s494_s26  }
   0xa   :  { %s496_s14 = smov [#allocation7]   ;;  %s497_s16 = smov [#allocation8]  }
   0xb   :  { %s62_s15 = sshll.u32 %s496_s14, 4  ;;  %s77_s7 = sshll.u32 %s497_s16, 4  ;;  %s63_s15 = int_to_ptr.vmem [resolvable:$true] %s62_s15  ;;  %s78_s7 = int_to_ptr.vmem [resolvable:$true] %s77_s7 }
   0xc   :  { %68 = dma.hbm_to_vmem [thread:$0]  %s61_s5, 2048, %s63_s15, [#allocation6], %s493_s25, %s493_s25, %s494_s26  }
   0xd   :  { %83 = dma.hbm_to_vmem [thread:$0]  %s76_s13, 2048, %s78_s7, [#allocation9], %s493_s25, %s493_s25, %s494_s26  }
   0xe   :  { %484 = dma.done.wait [#allocation3], 2048  }
   0xf   :  { %485 = vsyncadd [#allocation3], 4294965248 }
  0x10   :  { %486 = dma.done.wait [#allocation6], 4096  }
  0x11   :  { %487 = vsyncadd [#allocation6], 4294963200 }
  0x12   :  { %488 = dma.done.wait [#allocation9], 2048  }
  0x13   :  { %489 = vsyncadd [#allocation9], 4294965248  ;;  %vm109_vm0 = vcmask 64512   ;;  %v104_v0 = vld [vmem:[%s616_s1] sm:$0xff]  ;;  %v158_v2 = vld [vmem:[#allocation2 + $0x78] sm:$0xff]  ;;  %s498_s29 = smov [#allocation10]  }
  0x14   :  { %v102_v1 = vld [vmem:[%s615_s0] sm:$0xff]  ;;  %131 = vmatpush.msra.mxu0 %v104_v0  ;;  %v157_v3 = vld [vmem:[#allocation2 + $0x70] sm:$0xff]  ;;  %163 = vmatpush.msra.mxu1 %v158_v2  ;;  %v156_v4 = vld [vmem:[#allocation2 + $0x68] sm:$0xff]  ;;  %s333_s30 = sshll.u32 %s498_s29, 4  ;;  %s335_s3 = sshll.u32 %s626_s11, 4  ;;  %s334_s30 = int_to_ptr.vmem [resolvable:$true] %s333_s30  ;;  %s336_s3 = int_to_ptr.hbm [resolvable:$true] %s335_s3 }
  0x15   :  { %350 = vmatmul.msk.f32.vlgmr.msra.gmra.mxu0 %vm109_vm0, %v102_v1  ;;  %v155_v5 = vld [vmem:[#allocation2 + $0x60] sm:$0xff]  ;;  %v103_v6 = vld [vmem:[%s615_s0 + $0x8] sm:$0xff]  ;;  %v154_v7 = vld [vmem:[#allocation2 + $0x58] sm:$0xff] }
  0x16   :  { %164 = vmatpush.msra.mxu1 %v157_v3  ;;  %v153_v8 = vld [vmem:[#allocation2 + $0x50] sm:$0xff]  ;;  %v152_v9 = vld [vmem:[#allocation2 + $0x48] sm:$0xff]  ;;  %v151_v10 = vld [vmem:[#allocation2 + $0x40] sm:$0xff] }
  0x17   :  { %v150_v11 = vld [vmem:[#allocation2 + $0x38] sm:$0xff]  ;;  %v149_v12 = vld [vmem:[#allocation2 + $0x30] sm:$0xff]  ;;  %v148_v13 = vld [vmem:[#allocation2 + $0x28] sm:$0xff] }
  0x18   :  { %165 = vmatpush.msra.mxu1 %v156_v4  ;;  %v147_v14 = vld [vmem:[#allocation2 + $0x20] sm:$0xff]  ;;  %v146_v15 = vld [vmem:[#allocation2 + $0x18] sm:$0xff]  ;;  %v145_v16 = vld [vmem:[#allocation2 + $0x10] sm:$0xff] }
  0x19   :  { %v144_v17 = vld [vmem:[#allocation2 + $0x8] sm:$0xff]  ;;  %v143_v18 = vld [vmem:[#allocation2] sm:$0xff]  ;;  %v205_v19 = vld [vmem:[#allocation5 + $0x78] sm:$0xff] }
  0x1a   :  { %166 = vmatpush.msra.mxu1 %v155_v5  ;;  %v204_v20 = vld [vmem:[#allocation5 + $0x70] sm:$0xff]  ;;  %210 = vmatpush.msra.mxu2 %v205_v19  ;;  %v203_v21 = vld [vmem:[#allocation5 + $0x68] sm:$0xff]  ;;  %v202_v22 = vld [vmem:[#allocation5 + $0x60] sm:$0xff] }
  0x1b   :  { %v201_v23 = vld [vmem:[#allocation5 + $0x58] sm:$0xff]  ;;  %v200_v24 = vld [vmem:[#allocation5 + $0x50] sm:$0xff]  ;;  %v199_v25 = vld [vmem:[#allocation5 + $0x48] sm:$0xff] }
  0x1c   :  { %167 = vmatpush.msra.mxu1 %v154_v7  ;;  %211 = vmatpush.msra.mxu2 %v204_v20  ;;  %v198_v26 = vld [vmem:[#allocation5 + $0x40] sm:$0xff]  ;;  %v197_v28 = vld [vmem:[#allocation5 + $0x38] sm:$0xff]  ;;  %v196_v29 = vld [vmem:[#allocation5 + $0x30] sm:$0xff] }
  0x1d   :  { %351 = vmatmul.msk.f32.gmra.mxu0 %vm109_vm0, %v103_v6  ;;  %v359_v27 = vld [vmem:[%s617_s2] ss:$0 sm:$0xff]  ;;  %v195_v32 = vld [vmem:[#allocation5 + $0x28] sm:$0xff]  ;;  %v193_v40 = vld [vmem:[#allocation5 + $0x18] sm:$0xff] }
  0x1e   :  { %168 = vmatpush.msra.mxu1 %v153_v8  ;;  %212 = vmatpush.msra.mxu2 %v203_v21  ;;  %v194_v34 = vld [vmem:[#allocation5 + $0x20] sm:$0xff]  ;;  %v192_v41 = vld [vmem:[#allocation5 + $0x10] sm:$0xff]  ;;  %v191_v42 = vld [vmem:[#allocation5 + $0x8] sm:$0xff] }
  0x1f   :  { %v190_v43 = vld [vmem:[#allocation5] sm:$0xff]  ;;  %v252_v44 = vld [vmem:[#allocation7 + $0x78] sm:$0xff]  ;;  %v251_v45 = vld [vmem:[#allocation7 + $0x70] sm:$0xff] }
  0x20   :  { %169 = vmatpush.msra.mxu1 %v152_v9  ;;  %213 = vmatpush.msra.mxu2 %v202_v22  ;;  %v250_v46 = vld [vmem:[#allocation7 + $0x68] sm:$0xff]  ;;  %v249_v47 = vld [vmem:[#allocation7 + $0x60] sm:$0xff]  ;;  %v248_v48 = vld [vmem:[#allocation7 + $0x58] sm:$0xff] }
  0x21   :  { %257 = vmatpush.msra.mxu3 %v252_v44  ;;  %v247_v49 = vld [vmem:[#allocation7 + $0x50] sm:$0xff]  ;;  %v246_v50 = vld [vmem:[#allocation7 + $0x48] sm:$0xff]  ;;  %v245_v51 = vld [vmem:[#allocation7 + $0x40] sm:$0xff] }
  0x22   :  { %170 = vmatpush.msra.mxu1 %v151_v10  ;;  %214 = vmatpush.msra.mxu2 %v201_v23  ;;  %v360_v52 = vld [vmem:[%s619_s4] ss:$0 sm:$0xff]  ;;  %v244_v53 = vld [vmem:[#allocation7 + $0x38] sm:$0xff]  ;;  %v243_v54 = vld [vmem:[#allocation7 + $0x30] sm:$0xff] }
  0x23   :  { %258 = vmatpush.msra.mxu3 %v251_v45  ;;  %v242_v57 = vld [vmem:[#allocation7 + $0x28] sm:$0xff]  ;;  %v241_v59 = vld [vmem:[#allocation7 + $0x20] sm:$0xff]  ;;  %v240_v1 = vld [vmem:[#allocation7 + $0x18] sm:$0xff] }
  0x24   :  { %171 = vmatpush.msra.mxu1 %v150_v11  ;;  %215 = vmatpush.msra.mxu2 %v200_v24  ;;  %v239_v2 = vld [vmem:[#allocation7 + $0x10] sm:$0xff]  ;;  %v238_v3 = vld [vmem:[#allocation7 + $0x8] sm:$0xff]  ;;  %v237_v4 = vld [vmem:[#allocation7] sm:$0xff] }
  0x25   :  { %259 = vmatpush.msra.mxu3 %v250_v46  ;;  %v299_v5 = vld [vmem:[#allocation8 + $0x78] sm:$0xff]  ;;  %v298_v6 = vld [vmem:[#allocation8 + $0x70] sm:$0xff]  ;;  %v297_v7 = vld [vmem:[#allocation8 + $0x68] sm:$0xff] }
  0x26   :  { %172 = vmatpush.msra.mxu1 %v149_v12  ;;  %216 = vmatpush.msra.mxu2 %v199_v25  ;;  %v296_v8 = vld [vmem:[#allocation8 + $0x60] sm:$0xff]  ;;  %v295_v9 = vld [vmem:[#allocation8 + $0x58] sm:$0xff]  ;;  %v294_v10 = vld [vmem:[#allocation8 + $0x50] sm:$0xff] }
  0x27   :  { %260 = vmatpush.msra.mxu3 %v249_v47  ;;  %304 = vmatpush.msrb.mxu0 %v299_v5  ;;  %v293_v11 = vld [vmem:[#allocation8 + $0x48] sm:$0xff]  ;;  %v292_v12 = vld [vmem:[#allocation8 + $0x40] sm:$0xff] }
  0x28   :  { %173 = vmatpush.msra.mxu1 %v148_v13  ;;  %217 = vmatpush.msra.mxu2 %v198_v26  ;;  %v361_v13 = vld [vmem:[%s621_s6] ss:$0 sm:$0xff]  ;;  %v287_v26 = vld [vmem:[#allocation8 + $0x18] sm:$0xff] }
  0x29   :  { %261 = vmatpush.msra.mxu3 %v248_v48  ;;  %305 = vmatpush.msrb.mxu0 %v298_v6  ;;  %v288_v20 = vld [vmem:[#allocation8 + $0x20] sm:$0xff] }
  0x2a   :  { %174 = vmatpush.msra.mxu1 %v147_v14  ;;  %218 = vmatpush.msra.mxu2 %v197_v28  ;;  %v291_v14 = vld [vmem:[#allocation8 + $0x38] sm:$0xff]  ;;  %v285_v28 = vld [vmem:[#allocation8 + $0x8] sm:$0xff] }
  0x2b   :  { %262 = vmatpush.msra.mxu3 %v247_v49  ;;  %306 = vmatpush.msrb.mxu0 %v297_v7 }
  0x2c   :  { %175 = vmatpush.msra.mxu1 %v146_v15  ;;  %219 = vmatpush.msra.mxu2 %v196_v29  ;;  %v290_v15 = vld [vmem:[#allocation8 + $0x30] sm:$0xff]  ;;  %v284_v29 = vld [vmem:[#allocation8] sm:$0xff] }
  0x2d   :  { %263 = vmatpush.msra.mxu3 %v246_v50  ;;  %307 = vmatpush.msrb.mxu0 %v296_v8 }
  0x2e   :  { %176 = vmatpush.msra.mxu1 %v145_v16  ;;  %220 = vmatpush.msra.mxu2 %v195_v32 }
  0x2f   :  { %264 = vmatpush.msra.mxu3 %v245_v51  ;;  %308 = vmatpush.msrb.mxu0 %v295_v9 }
  0x30   :  { %177 = vmatpush.msra.mxu1 %v144_v17  ;;  %221 = vmatpush.msra.mxu2 %v194_v34 }
  0x31   :  { %265 = vmatpush.msra.mxu3 %v244_v53  ;;  %309 = vmatpush.msrb.mxu0 %v294_v10 }
  0x32   :  { %178 = vmatpush.msra.mxu1 %v143_v18  ;;  %222 = vmatpush.msra.mxu2 %v193_v40  ;;  %v289_v18 = vld [vmem:[#allocation8 + $0x28] sm:$0xff] }
  0x33   :  { %266 = vmatpush.msra.mxu3 %v243_v54  ;;  %310 = vmatpush.msrb.mxu0 %v293_v11 }
  0x34   :  { %223 = vmatpush.msra.mxu2 %v192_v41 }
  0x35   :  { %267 = vmatpush.msra.mxu3 %v242_v57  ;;  %311 = vmatpush.msrb.mxu0 %v292_v12 }
  0x36   :  { %224 = vmatpush.msra.mxu2 %v191_v42 }
  0x37   :  { %268 = vmatpush.msra.mxu3 %v241_v59  ;;  %312 = vmatpush.msrb.mxu0 %v291_v14 }
  0x38   :  { %225 = vmatpush.msra.mxu2 %v190_v43 }
  0x39   :  { %269 = vmatpush.msra.mxu3 %v240_v1  ;;  %313 = vmatpush.msrb.mxu0 %v290_v15 }
  0x3b   :  { %270 = vmatpush.msra.mxu3 %v239_v2  ;;  %314 = vmatpush.msrb.mxu0 %v289_v18 }
  0x3d   :  { %271 = vmatpush.msra.mxu3 %v238_v3  ;;  %315 = vmatpush.msrb.mxu0 %v288_v20 }
  0x3f   :  { %272 = vmatpush.msra.mxu3 %v237_v4  ;;  %316 = vmatpush.msrb.mxu0 %v287_v26 }
  0x92   :  { %v133_v30 = vpop.f32.mrf.mxu0 }
  0x93   :  { %v134_v31 = vadd.f32 %v359_v27, %v133_v30  ;;  %v362_v30 = vld [vmem:[%s623_s8] ss:$0 sm:$0xff] }
  0x95   :  { %v139_v33 = vmul.f32 0.01, %v134_v31 }
  0x97   :  { %v141_v35 = vmax.f32 %v134_v31, %v139_v33 }
  0x99   :  { %179 = vmatmul.f32.vlgmr.msra.gmra.mxu1 %v141_v35 }
  0x9a   :  { %v136_v36 = vpop.f32.mrf.mxu0 }
  0x9b   :  { %v137_v37 = vadd.f32 %v359_v27, %v136_v36  ;;  %v286_v27 = vld [vmem:[#allocation8 + $0x10] sm:$0xff] }
  0x9c   :  { %317 = vmatpush.msrb.mxu0 %v286_v27 }
  0x9d   :  { %v140_v38 = vmul.f32 0.01, %v137_v37 }
  0x9e   :  { %318 = vmatpush.msrb.mxu0 %v285_v28 }
  0x9f   :  { %v142_v39 = vmax.f32 %v137_v37, %v140_v38 }
  0xa0   :  { %319 = vmatpush.msrb.mxu0 %v284_v29 }
  0xa1   :  { %182 = vmatmul.f32.gmra.mxu1 %v142_v39  ;;  %v363_v39 = vld [vmem:[%s625_s10] ss:$0 sm:$0xff] }
 0x116   :  { %v180_v55 = vpop.f32.mrf.mxu1 }
 0x117   :  { %v181_v56 = vadd.f32 %v360_v52, %v180_v55 }
 0x119   :  { %v186_v58 = vmul.f32 0.01, %v181_v56 }
 0x11b   :  { %v188_v60 = vmax.f32 %v181_v56, %v186_v58 }
 0x11d   :  { %226 = vmatmul.f32.vlgmr.msra.gmra.mxu2 %v188_v60 }
 0x11e   :  { %v183_v61 = vpop.f32.mrf.mxu1 }
 0x11f   :  { %v184_v62 = vadd.f32 %v360_v52, %v183_v61 }
 0x121   :  { %v187_v63 = vmul.f32 0.01, %v184_v62 }
 0x123   :  { %v189_v0 = vmax.f32 %v184_v62, %v187_v63 }
 0x125   :  { %229 = vmatmul.f32.gmra.mxu2 %v189_v0 }
 0x1a0   :  { %v227_v16 = vpop.f32.mrf.mxu2 }
 0x1a1   :  { %v228_v17 = vadd.f32 %v361_v13, %v227_v16 }
 0x1a3   :  { %v233_v19 = vmul.f32 0.01, %v228_v17 }
 0x1a5   :  { %v235_v21 = vmax.f32 %v228_v17, %v233_v19 }
 0x1a7   :  { %273 = vmatmul.f32.vlgmr.msra.gmra.mxu3 %v235_v21 }
 0x1a8   :  { %v230_v22 = vpop.f32.mrf.mxu2 }
 0x1a9   :  { %v231_v23 = vadd.f32 %v361_v13, %v230_v22 }
 0x1ab   :  { %v234_v24 = vmul.f32 0.01, %v231_v23 }
 0x1ad   :  { %v236_v25 = vmax.f32 %v231_v23, %v234_v24 }
 0x1af   :  { %276 = vmatmul.f32.gmra.mxu3 %v236_v25 }
 0x22a   :  { %v274_v31 = vpop.f32.mrf.mxu3 }
 0x22b   :  { %v275_v32 = vadd.f32 %v362_v30, %v274_v31 }
 0x22d   :  { %v280_v33 = vmul.f32 0.01, %v275_v32 }
 0x22f   :  { %v282_v34 = vmax.f32 %v275_v32, %v280_v33 }
 0x231   :  { %320 = vmatmul.f32.vlgmr.msrb.gmra.mxu0 %v282_v34 }
 0x232   :  { %v277_v35 = vpop.f32.mrf.mxu3 }
 0x233   :  { %v278_v36 = vadd.f32 %v362_v30, %v277_v35 }
 0x235   :  { %v281_v37 = vmul.f32 0.01, %v278_v36 }
 0x237   :  { %v283_v38 = vmax.f32 %v278_v36, %v281_v37 }
 0x239   :  { %323 = vmatmul.f32.gmra.mxu0 %v283_v38 }
 0x2ae   :  { %v321_v40 = vpop.f32.mrf.mxu0 }
 0x2af   :  { %v322_v41 = vadd.f32 %v363_v39, %v321_v40 }
 0x2b1   :  { %327 = vst [vmem:[#allocation10] sm:$0xff] %v322_v41 }
 0x2b6   :  { %v324_v42 = vpop.f32.mrf.mxu0 }
 0x2b7   :  { %v325_v43 = vadd.f32 %v363_v39, %v324_v42 }
 0x2b9   :  { %328 = vst [vmem:[#allocation10 + $0x8] sm:$0xff] %v325_v43 }
 0x2ba   :  { %341 = dma.vmem_to_hbm [thread:$0]  %s334_s30, 256, %s336_s3, [#allocation4], %s493_s25, %s493_s25, %s494_s26  }
 0x2bb   :  { %490 = dma.done.wait [#allocation4], 256  }
 0x2bc   :  { %491 = vsyncadd [#allocation4], 4294967040 }
 0x2bd   :  { %346 = vsyncpa [#allocation3], 1 }
 0x2be   :  { %347 = vsyncpa [#allocation6], 1 }
 0x2bf   :  { %348 = vsyncpa [#allocation9], 1 }
 0x2c0   :  { %349 = vsyncpa [#allocation4], 1 }

// kernel: tpu_custom_call.1
= control target key start
LH: loop header
LB: loop body
LE: loop exit
PB: predicated region body
PF: predicated region fallthrough
CT: control target
= control target key end

     0   :  { %16 = vsyncpa [#allocation3], 0  ;;  %s615_s0 = inlined_call_operand.vmem [shape: f32[16,8], index: 0, kind: input, shape index: {}]   ;;  %s616_s1 = inlined_call_operand.vmem [shape: f32[8,128], index: 1, kind: input, shape index: {}]   ;;  %s617_s2 = inlined_call_operand.vmem [shape: f32[1,128], index: 2, kind: input, shape index: {}]   ;;  %s618_s3 = inlined_call_operand.hbm [shape: f32[128,128], index: 3, kind: input, shape index: {}]   ;;  %s619_s4 = inlined_call_operand.vmem [shape: f32[1,128], index: 4, kind: input, shape index: {}]   ;;  %s620_s5 = inlined_call_operand.hbm [shape: f32[128,128], index: 5, kind: input, shape index: {}]   ;;  %s621_s6 = inlined_call_operand.vmem [shape: f32[1,128], index: 6, kind: input, shape index: {}]   ;;  %s622_s7 = inlined_call_operand.hbm [shape: f32[128,128], index: 7, kind: input, shape index: {}]   ;;  %s623_s8 = inlined_call_operand.vmem [shape: f32[1,128], index: 8, kind: input, shape index: {}]   ;;  %s624_s9 = inlined_call_operand.hbm [shape: f32[128,128], index: 9, kind: input, shape index: {}]   ;;  %s625_s10 = inlined_call_operand.vmem [shape: f32[1,128], index: 10, kind: input, shape index: {}]   ;;  %s626_s11 = inlined_call_operand.hbm [shape: f32[16,128], index: 11, kind: output, shape index: {}]  }
   0x1   :  { %17 = vsyncpa [#allocation6], 0 }
   0x2   :  { %18 = vsyncpa [#allocation9], 0 }
   0x3   :  { %19 = vsyncpa [#allocation4], 0  ;;  %s45_s19 = sshll.u32 %s620_s5, 4  ;;  %s492_s20 = smov [#allocation5]   ;;  %s46_s19 = int_to_ptr.hbm [resolvable:$true] %s45_s19 }
   0x4   :  { %s47_s21 = sshll.u32 %s492_s20, 4  ;;  %s30_s24 = sshll.u32 %s618_s3, 4  ;;  %s48_s21 = int_to_ptr.vmem [resolvable:$true] %s47_s21  ;;  %s31_s24 = int_to_ptr.hbm [resolvable:$true] %s30_s24 }
   0x5   :  { %s493_s25 = smov 128   ;;  %s494_s26 = smov 8  }
   0x6   :  { %53 = dma.hbm_to_vmem [thread:$0]  %s46_s19, 2048, %s48_s21, [#allocation6], %s493_s25, %s493_s25, %s494_s26  }
   0x7   :  { %s495_s27 = smov [#allocation2]   ;;  %s60_s5 = sshll.u32 %s622_s7, 4  ;;  %s61_s5 = int_to_ptr.hbm [resolvable:$true] %s60_s5 }
   0x8   :  { %s32_s28 = sshll.u32 %s495_s27, 4  ;;  %s75_s13 = sshll.u32 %s624_s9, 4  ;;  %s33_s28 = int_to_ptr.vmem [resolvable:$true] %s32_s28  ;;  %s76_s13 = int_to_ptr.hbm [resolvable:$true] %s75_s13 }
   0x9   :  { %38 = dma.hbm_to_vmem [thread:$0]  %s31_s24, 2048, %s33_s28, [#allocation3], %s493_s25, %s493_s25, %s494_s26  }
   0xa   :  { %s496_s14 = smov [#allocation7]   ;;  %s497_s16 = smov [#allocation8]  }
   0xb   :  { %s62_s15 = sshll.u32 %s496_s14, 4  ;;  %s77_s7 = sshll.u32 %s497_s16, 4  ;;  %s63_s15 = int_to_ptr.vmem [resolvable:$true] %s62_s15  ;;  %s78_s7 = int_to_ptr.vmem [resolvable:$true] %s77_s7 }
   0xc   :  { %68 = dma.hbm_to_vmem [thread:$0]  %s61_s5, 2048, %s63_s15, [#allocation6], %s493_s25, %s493_s25, %s494_s26  }
   0xd   :  { %83 = dma.hbm_to_vmem [thread:$0]  %s76_s13, 2048, %s78_s7, [#allocation9], %s493_s25, %s493_s25, %s494_s26  }
   0xe   :  { %484 = dma.done.wait [#allocation3], 2048  }
   0xf   :  { %485 = vsyncadd [#allocation3], 4294965248 }
  0x10   :  { %486 = dma.done.wait [#allocation6], 4096  }
  0x11   :  { %487 = vsyncadd [#allocation6], 4294963200 }
  0x12   :  { %488 = dma.done.wait [#allocation9], 2048  }
  0x13   :  { %489 = vsyncadd [#allocation9], 4294965248  ;;  %vm109_vm0 = vcmask 64512   ;;  %v104_v0 = vld [vmem:[%s616_s1] sm:$0xff]  ;;  %v158_v2 = vld [vmem:[#allocation2 + $0x78] sm:$0xff]  ;;  %s498_s29 = smov [#allocation10]  }
  0x14   :  { %v102_v1 = vld [vmem:[%s615_s0] sm:$0xff]  ;;  %131 = vmatpush.msra.mxu0 %v104_v0  ;;  %v157_v3 = vld [vmem:[#allocation2 + $0x70] sm:$0xff]  ;;  %163 = vmatpush.msra.mxu1 %v158_v2  ;;  %v156_v4 = vld [vmem:[#allocation2 + $0x68] sm:$0xff]  ;;  %s333_s30 = sshll.u32 %s498_s29, 4  ;;  %s335_s3 = sshll.u32 %s626_s11, 4  ;;  %s334_s30 = int_to_ptr.vmem [resolvable:$true] %s333_s30  ;;  %s336_s3 = int_to_ptr.hbm [resolvable:$true] %s335_s3 }
  0x15   :  { %350 = vmatmul.msk.f32.vlgmr.msra.gmra.mxu0 %vm109_vm0, %v102_v1  ;;  %v155_v5 = vld [vmem:[#allocation2 + $0x60] sm:$0xff]  ;;  %v103_v6 = vld [vmem:[%s615_s0 + $0x8] sm:$0xff]  ;;  %v154_v7 = vld [vmem:[#allocation2 + $0x58] sm:$0xff] }
  0x16   :  { %164 = vmatpush.msra.mxu1 %v157_v3  ;;  %v153_v8 = vld [vmem:[#allocation2 + $0x50] sm:$0xff]  ;;  %v152_v9 = vld [vmem:[#allocation2 + $0x48] sm:$0xff]  ;;  %v151_v10 = vld [vmem:[#allocation2 + $0x40] sm:$0xff] }
  0x17   :  { %v150_v11 = vld [vmem:[#allocation2 + $0x38] sm:$0xff]  ;;  %v149_v12 = vld [vmem:[#allocation2 + $0x30] sm:$0xff]  ;;  %v148_v13 = vld [vmem:[#allocation2 + $0x28] sm:$0xff] }
  0x18   :  { %165 = vmatpush.msra.mxu1 %v156_v4  ;;  %v147_v14 = vld [vmem:[#allocation2 + $0x20] sm:$0xff]  ;;  %v146_v15 = vld [vmem:[#allocation2 + $0x18] sm:$0xff]  ;;  %v145_v16 = vld [vmem:[#allocation2 + $0x10] sm:$0xff] }
  0x19   :  { %v144_v17 = vld [vmem:[#allocation2 + $0x8] sm:$0xff]  ;;  %v143_v18 = vld [vmem:[#allocation2] sm:$0xff]  ;;  %v205_v19 = vld [vmem:[#allocation5 + $0x78] sm:$0xff] }
  0x1a   :  { %166 = vmatpush.msra.mxu1 %v155_v5  ;;  %v204_v20 = vld [vmem:[#allocation5 + $0x70] sm:$0xff]  ;;  %210 = vmatpush.msra.mxu2 %v205_v19  ;;  %v203_v21 = vld [vmem:[#allocation5 + $0x68] sm:$0xff]  ;;  %v202_v22 = vld [vmem:[#allocation5 + $0x60] sm:$0xff] }
  0x1b   :  { %v201_v23 = vld [vmem:[#allocation5 + $0x58] sm:$0xff]  ;;  %v200_v24 = vld [vmem:[#allocation5 + $0x50] sm:$0xff]  ;;  %v199_v25 = vld [vmem:[#allocation5 + $0x48] sm:$0xff] }
  0x1c   :  { %167 = vmatpush.msra.mxu1 %v154_v7  ;;  %211 = vmatpush.msra.mxu2 %v204_v20  ;;  %v198_v26 = vld [vmem:[#allocation5 + $0x40] sm:$0xff]  ;;  %v197_v28 = vld [vmem:[#allocation5 + $0x38] sm:$0xff]  ;;  %v196_v29 = vld [vmem:[#allocation5 + $0x30] sm:$0xff] }
  0x1d   :  { %351 = vmatmul.msk.f32.gmra.mxu0 %vm109_vm0, %v103_v6  ;;  %v359_v27 = vld [vmem:[%s617_s2] ss:$0 sm:$0xff]  ;;  %v195_v32 = vld [vmem:[#allocation5 + $0x28] sm:$0xff]  ;;  %v193_v40 = vld [vmem:[#allocation5 + $0x18] sm:$0xff] }
  0x1e   :  { %168 = vmatpush.msra.mxu1 %v153_v8  ;;  %212 = vmatpush.msra.mxu2 %v203_v21  ;;  %v194_v34 = vld [vmem:[#allocation5 + $0x20] sm:$0xff]  ;;  %v192_v41 = vld [vmem:[#allocation5 + $0x10] sm:$0xff]  ;;  %v191_v42 = vld [vmem:[#allocation5 + $0x8] sm:$0xff] }
  0x1f   :  { %v190_v43 = vld [vmem:[#allocation5] sm:$0xff]  ;;  %v252_v44 = vld [vmem:[#allocation7 + $0x78] sm:$0xff]  ;;  %v251_v45 = vld [vmem:[#allocation7 + $0x70] sm:$0xff] }
  0x20   :  { %169 = vmatpush.msra.mxu1 %v152_v9  ;;  %213 = vmatpush.msra.mxu2 %v202_v22  ;;  %v250_v46 = vld [vmem:[#allocation7 + $0x68] sm:$0xff]  ;;  %v249_v47 = vld [vmem:[#allocation7 + $0x60] sm:$0xff]  ;;  %v248_v48 = vld [vmem:[#allocation7 + $0x58] sm:$0xff] }
  0x21   :  { %257 = vmatpush.msra.mxu3 %v252_v44  ;;  %v247_v49 = vld [vmem:[#allocation7 + $0x50] sm:$0xff]  ;;  %v246_v50 = vld [vmem:[#allocation7 + $0x48] sm:$0xff]  ;;  %v245_v51 = vld [vmem:[#allocation7 + $0x40] sm:$0xff] }
  0x22   :  { %170 = vmatpush.msra.mxu1 %v151_v10  ;;  %214 = vmatpush.msra.mxu2 %v201_v23  ;;  %v360_v52 = vld [vmem:[%s619_s4] ss:$0 sm:$0xff]  ;;  %v244_v53 = vld [vmem:[#allocation7 + $0x38] sm:$0xff]  ;;  %v243_v54 = vld [vmem:[#allocation7 + $0x30] sm:$0xff] }
  0x23   :  { %258 = vmatpush.msra.mxu3 %v251_v45  ;;  %v242_v57 = vld [vmem:[#allocation7 + $0x28] sm:$0xff]  ;;  %v241_v59 = vld [vmem:[#allocation7 + $0x20] sm:$0xff]  ;;  %v240_v1 = vld [vmem:[#allocation7 + $0x18] sm:$0xff] }
  0x24   :  { %171 = vmatpush.msra.mxu1 %v150_v11  ;;  %215 = vmatpush.msra.mxu2 %v200_v24  ;;  %v239_v2 = vld [vmem:[#allocation7 + $0x10] sm:$0xff]  ;;  %v238_v3 = vld [vmem:[#allocation7 + $0x8] sm:$0xff]  ;;  %v237_v4 = vld [vmem:[#allocation7] sm:$0xff] }
  0x25   :  { %259 = vmatpush.msra.mxu3 %v250_v46  ;;  %v299_v5 = vld [vmem:[#allocation8 + $0x78] sm:$0xff]  ;;  %v298_v6 = vld [vmem:[#allocation8 + $0x70] sm:$0xff]  ;;  %v297_v7 = vld [vmem:[#allocation8 + $0x68] sm:$0xff] }
  0x26   :  { %172 = vmatpush.msra.mxu1 %v149_v12  ;;  %216 = vmatpush.msra.mxu2 %v199_v25  ;;  %v296_v8 = vld [vmem:[#allocation8 + $0x60] sm:$0xff]  ;;  %v295_v9 = vld [vmem:[#allocation8 + $0x58] sm:$0xff]  ;;  %v294_v10 = vld [vmem:[#allocation8 + $0x50] sm:$0xff] }
  0x27   :  { %260 = vmatpush.msra.mxu3 %v249_v47  ;;  %304 = vmatpush.msrb.mxu0 %v299_v5  ;;  %v293_v11 = vld [vmem:[#allocation8 + $0x48] sm:$0xff]  ;;  %v292_v12 = vld [vmem:[#allocation8 + $0x40] sm:$0xff] }
  0x28   :  { %173 = vmatpush.msra.mxu1 %v148_v13  ;;  %217 = vmatpush.msra.mxu2 %v198_v26  ;;  %v361_v13 = vld [vmem:[%s621_s6] ss:$0 sm:$0xff]  ;;  %v287_v26 = vld [vmem:[#allocation8 + $0x18] sm:$0xff] }
  0x29   :  { %261 = vmatpush.msra.mxu3 %v248_v48  ;;  %305 = vmatpush.msrb.mxu0 %v298_v6  ;;  %v288_v20 = vld [vmem:[#allocation8 + $0x20] sm:$0xff] }
  0x2a   :  { %174 = vmatpush.msra.mxu1 %v147_v14  ;;  %218 = vmatpush.msra.mxu2 %v197_v28  ;;  %v291_v14 = vld [vmem:[#allocation8 + $0x38] sm:$0xff]  ;;  %v285_v28 = vld [vmem:[#allocation8 + $0x8] sm:$0xff] }
  0x2b   :  { %262 = vmatpush.msra.mxu3 %v247_v49  ;;  %306 = vmatpush.msrb.mxu0 %v297_v7 }
  0x2c   :  { %175 = vmatpush.msra.mxu1 %v146_v15  ;;  %219 = vmatpush.msra.mxu2 %v196_v29  ;;  %v290_v15 = vld [vmem:[#allocation8 + $0x30] sm:$0xff]  ;;  %v284_v29 = vld [vmem:[#allocation8] sm:$0xff] }
  0x2d   :  { %263 = vmatpush.msra.mxu3 %v246_v50  ;;  %307 = vmatpush.msrb.mxu0 %v296_v8 }
  0x2e   :  { %176 = vmatpush.msra.mxu1 %v145_v16  ;;  %220 = vmatpush.msra.mxu2 %v195_v32 }
  0x2f   :  { %264 = vmatpush.msra.mxu3 %v245_v51  ;;  %308 = vmatpush.msrb.mxu0 %v295_v9 }
  0x30   :  { %177 = vmatpush.msra.mxu1 %v144_v17  ;;  %221 = vmatpush.msra.mxu2 %v194_v34 }
  0x31   :  { %265 = vmatpush.msra.mxu3 %v244_v53  ;;  %309 = vmatpush.msrb.mxu0 %v294_v10 }
  0x32   :  { %178 = vmatpush.msra.mxu1 %v143_v18  ;;  %222 = vmatpush.msra.mxu2 %v193_v40  ;;  %v289_v18 = vld [vmem:[#allocation8 + $0x28] sm:$0xff] }
  0x33   :  { %266 = vmatpush.msra.mxu3 %v243_v54  ;;  %310 = vmatpush.msrb.mxu0 %v293_v11 }
  0x34   :  { %223 = vmatpush.msra.mxu2 %v192_v41 }
  0x35   :  { %267 = vmatpush.msra.mxu3 %v242_v57  ;;  %311 = vmatpush.msrb.mxu0 %v292_v12 }
  0x36   :  { %224 = vmatpush.msra.mxu2 %v191_v42 }
  0x37   :  { %268 = vmatpush.msra.mxu3 %v241_v59  ;;  %312 = vmatpush.msrb.mxu0 %v291_v14 }
  0x38   :  { %225 = vmatpush.msra.mxu2 %v190_v43 }
  0x39   :  { %269 = vmatpush.msra.mxu3 %v240_v1  ;;  %313 = vmatpush.msrb.mxu0 %v290_v15 }
  0x3b   :  { %270 = vmatpush.msra.mxu3 %v239_v2  ;;  %314 = vmatpush.msrb.mxu0 %v289_v18 }
  0x3d   :  { %271 = vmatpush.msra.mxu3 %v238_v3  ;;  %315 = vmatpush.msrb.mxu0 %v288_v20 }
  0x3f   :  { %272 = vmatpush.msra.mxu3 %v237_v4  ;;  %316 = vmatpush.msrb.mxu0 %v287_v26 }
  0x92   :  { %v133_v30 = vpop.f32.mrf.mxu0 }
  0x93   :  { %v134_v31 = vadd.f32 %v359_v27, %v133_v30  ;;  %v362_v30 = vld [vmem:[%s623_s8] ss:$0 sm:$0xff] }
  0x95   :  { %v139_v33 = vmul.f32 0.01, %v134_v31 }
  0x97   :  { %v141_v35 = vmax.f32 %v134_v31, %v139_v33 }
  0x99   :  { %179 = vmatmul.f32.vlgmr.msra.gmra.mxu1 %v141_v35 }
  0x9a   :  { %v136_v36 = vpop.f32.mrf.mxu0 }
  0x9b   :  { %v137_v37 = vadd.f32 %v359_v27, %v136_v36  ;;  %v286_v27 = vld [vmem:[#allocation8 + $0x10] sm:$0xff] }
  0x9c   :  { %317 = vmatpush.msrb.mxu0 %v286_v27 }
  0x9d   :  { %v140_v38 = vmul.f32 0.01, %v137_v37 }
  0x9e   :  { %318 = vmatpush.msrb.mxu0 %v285_v28 }
  0x9f   :  { %v142_v39 = vmax.f32 %v137_v37, %v140_v38 }
  0xa0   :  { %319 = vmatpush.msrb.mxu0 %v284_v29 }
  0xa1   :  { %182 = vmatmul.f32.gmra.mxu1 %v142_v39  ;;  %v363_v39 = vld [vmem:[%s625_s10] ss:$0 sm:$0xff] }
 0x116   :  { %v180_v55 = vpop.f32.mrf.mxu1 }
 0x117   :  { %v181_v56 = vadd.f32 %v360_v52, %v180_v55 }
 0x119   :  { %v186_v58 = vmul.f32 0.01, %v181_v56 }
 0x11b   :  { %v188_v60 = vmax.f32 %v181_v56, %v186_v58 }
 0x11d   :  { %226 = vmatmul.f32.vlgmr.msra.gmra.mxu2 %v188_v60 }
 0x11e   :  { %v183_v61 = vpop.f32.mrf.mxu1 }
 0x11f   :  { %v184_v62 = vadd.f32 %v360_v52, %v183_v61 }
 0x121   :  { %v187_v63 = vmul.f32 0.01, %v184_v62 }
 0x123   :  { %v189_v0 = vmax.f32 %v184_v62, %v187_v63 }
 0x125   :  { %229 = vmatmul.f32.gmra.mxu2 %v189_v0 }
 0x1a0   :  { %v227_v16 = vpop.f32.mrf.mxu2 }
 0x1a1   :  { %v228_v17 = vadd.f32 %v361_v13, %v227_v16 }
 0x1a3   :  { %v233_v19 = vmul.f32 0.01, %v228_v17 }
 0x1a5   :  { %v235_v21 = vmax.f32 %v228_v17, %v233_v19 }
 0x1a7   :  { %273 = vmatmul.f32.vlgmr.msra.gmra.mxu3 %v235_v21 }
 0x1a8   :  { %v230_v22 = vpop.f32.mrf.mxu2 }
 0x1a9   :  { %v231_v23 = vadd.f32 %v361_v13, %v230_v22 }
 0x1ab   :  { %v234_v24 = vmul.f32 0.01, %v231_v23 }
 0x1ad   :  { %v236_v25 = vmax.f32 %v231_v23, %v234_v24 }
 0x1af   :  { %276 = vmatmul.f32.gmra.mxu3 %v236_v25 }
 0x22a   :  { %v274_v31 = vpop.f32.mrf.mxu3 }
 0x22b   :  { %v275_v32 = vadd.f32 %v362_v30, %v274_v31 }
 0x22d   :  { %v280_v33 = vmul.f32 0.01, %v275_v32 }
 0x22f   :  { %v282_v34 = vmax.f32 %v275_v32, %v280_v33 }
 0x231   :  { %320 = vmatmul.f32.vlgmr.msrb.gmra.mxu0 %v282_v34 }
 0x232   :  { %v277_v35 = vpop.f32.mrf.mxu3 }
 0x233   :  { %v278_v36 = vadd.f32 %v362_v30, %v277_v35 }
 0x235   :  { %v281_v37 = vmul.f32 0.01, %v278_v36 }
 0x237   :  { %v283_v38 = vmax.f32 %v278_v36, %v281_v37 }
 0x239   :  { %323 = vmatmul.f32.gmra.mxu0 %v283_v38 }
 0x2ae   :  { %v321_v40 = vpop.f32.mrf.mxu0 }
 0x2af   :  { %v322_v41 = vadd.f32 %v363_v39, %v321_v40 }
 0x2b1   :  { %327 = vst [vmem:[#allocation10] sm:$0xff] %v322_v41 }
 0x2b6   :  { %v324_v42 = vpop.f32.mrf.mxu0 }
 0x2b7   :  { %v325_v43 = vadd.f32 %v363_v39, %v324_v42 }
 0x2b9   :  { %328 = vst [vmem:[#allocation10 + $0x8] sm:$0xff] %v325_v43 }
 0x2ba   :  { %341 = dma.vmem_to_hbm [thread:$0]  %s334_s30, 256, %s336_s3, [#allocation4], %s493_s25, %s493_s25, %s494_s26  }
 0x2bb   :  { %490 = dma.done.wait [#allocation4], 256  }
 0x2bc   :  { %491 = vsyncadd [#allocation4], 4294967040 }
 0x2bd   :  { %346 = vsyncpa [#allocation3], 1 }
 0x2be   :  { %347 = vsyncpa [#allocation6], 1 }
 0x2bf   :  { %348 = vsyncpa [#allocation9], 1 }
 0x2c0   :  { %349 = vsyncpa [#allocation4], 1 }

</bundles_post_ra>
